<compile_context>
chip_gen: v7x
topology: tpu7x:2x2x1
jax: 0.10.0
libtpu: 0.0.40
codegen_flags: <defaults>
</compile_context>

<pallas_src>
import functools

import jax
import jax.numpy as jnp
from jax.experimental import pallas as pl
from jax.experimental.pallas import tpu as pltpu


def _factorized_linear_kernel(x_ref, v_ref, u_ref, b_ref, o_ref):
    # h = x @ v  (low-rank projection), f32 accumulation on the MXU.
    h = jnp.dot(x_ref[...], v_ref[...], preferred_element_type=jnp.float32)
    # Cast the intermediate to the compute dtype of u (bf16 path halves vreg
    # pressure and doubles MXU rate on v6e/v7x; no-op for the f32 path).
    h = h.astype(u_ref.dtype)
    # y = h @ u + bias, f32 accumulation, bias add on the VPU in f32.
    y = jnp.dot(h, u_ref[...], preferred_element_type=jnp.float32)
    o_ref[...] = (y + b_ref[...].astype(jnp.float32)).astype(o_ref.dtype)


def _round_up(n, m):
    return (n + m - 1) // m * m


@functools.partial(jax.jit, static_argnames=("block_b", "block_n", "compute_dtype"))
def factorized_linear(x, v, u, bias, *, block_b=512, block_n=256, compute_dtype=None):
    """Fused  x @ v @ u + bias.

    x: (B, d_in), v: (d_in, r), u: (r, d_out), bias: (d_out,) -> (B, d_out).
    `compute_dtype=jnp.bfloat16` casts x/v/u (and the intermediate) to bf16
    while keeping f32 accumulation; output dtype follows x.
    """
    B, d_in = x.shape
    r = v.shape[1]
    d_out = u.shape[1]
    out_dtype = x.dtype

    if compute_dtype is not None:
        x = x.astype(compute_dtype)
        v = v.astype(compute_dtype)
        u = u.astype(compute_dtype)

    # ---- alignment / padding (all pads are zeros -> numerically exact) ----
    LANE, SUBLANE = 128, 8
    d_in_p = _round_up(d_in, LANE)                 # K of x@v, lane dim of x
    r_p = _round_up(r, LANE)                       # lane dim of v / K of h@u
    bn = min(block_n, _round_up(d_out, LANE))      # lane-dense d_out tile
    d_out_p = _round_up(d_out, bn)
    bb = min(block_b, _round_up(B, SUBLANE))       # batch (sublane) tile
    B_p = _round_up(B, bb)

    x_p = jnp.pad(x, ((0, B_p - B), (0, d_in_p - d_in)))
    v_p = jnp.pad(v, ((0, d_in_p - d_in), (0, r_p - r)))
    u_p = jnp.pad(u, ((0, r_p - r), (0, d_out_p - d_out)))
    b_p = jnp.pad(bias, (0, d_out_p - d_out)).reshape(1, d_out_p)

    grid = (B_p // bb, d_out_p // bn)

    flops = 2 * B_p * r_p * (d_in_p + d_out_p)
    bytes_accessed = (
        x_p.size * x_p.dtype.itemsize
        + v_p.size * v_p.dtype.itemsize
        + u_p.size * u_p.dtype.itemsize
        + b_p.size * b_p.dtype.itemsize
        + B_p * d_out_p * jnp.dtype(out_dtype).itemsize
    )

    out = pl.pallas_call(
        _factorized_linear_kernel,
        out_shape=jax.ShapeDtypeStruct((B_p, d_out_p), out_dtype),
        grid_spec=pltpu.PrefetchScalarGridSpec(
            num_scalar_prefetch=0,
            grid=grid,
            in_specs=[
                pl.BlockSpec((bb, d_in_p), lambda i, j: (i, 0)),    # x: batch tile
                pl.BlockSpec((d_in_p, r_p), lambda i, j: (0, 0)),   # v: resident
                pl.BlockSpec((r_p, bn), lambda i, j: (0, j)),       # u: d_out tile
                pl.BlockSpec((1, bn), lambda i, j: (0, j)),         # bias tile
            ],
            out_specs=pl.BlockSpec((bb, bn), lambda i, j: (i, j)),
        ),
        compiler_params=pltpu.CompilerParams(
            dimension_semantics=("parallel", "parallel"),
            vmem_limit_bytes=64 * 1024 * 1024,
        ),
        cost_estimate=pl.CostEstimate(
            flops=flops, transcendentals=0, bytes_accessed=bytes_accessed),
    )(x_p, v_p, u_p, b_p)

    return out[:B, :d_out]


def init_factorized_linear_params(key, d_in, d_out, rank):
    """Deterministically build (v, u, bias) the way FactorizedLinear.__init__ does."""
    kw, kb = jax.random.split(key)
    # nn.Linear-style init (uniform in +-1/sqrt(d_in)); exact distribution is
    # irrelevant for kernel semantics, determinism is what matters.
    bound = 1.0 / (d_in ** 0.5)
    w = jax.random.uniform(kw, (d_out, d_in), jnp.float32, -bound, bound)
    bias = jax.random.uniform(kb, (d_out,), jnp.float32, -bound, bound)

    # SVD factorization: w = u_full @ diag(s) @ vt
    u_full, s, vt = jnp.linalg.svd(w, full_matrices=False)
    s_sqrt = jnp.diag(jnp.sqrt(s[:rank]))           # (rank, rank)
    u_r = u_full[:, :rank]                          # (d_out, rank)
    vt_r = vt[:rank]                                # (rank, d_in)
    param_u = (u_r @ s_sqrt).T                      # (rank, d_out)
    param_v = (s_sqrt @ vt_r).T                     # (d_in, rank)
    return param_v, param_u, bias


if __name__ == "__main__":
    key = jax.random.PRNGKey(0)
    k_param, k_x = jax.random.split(key)

    B, d_in, d_out, rank = 8, 32, 16, 8
    v, u, bias = init_factorized_linear_params(k_param, d_in, d_out, rank)
    x = jax.random.normal(k_x, (B, d_in), jnp.float32)

    # Pure-JAX reference of the PyTorch forward: x @ v @ u + bias
    ref = x @ v @ u + bias

    # f32 path: exact (within f32) vs reference.
    out = jax.block_until_ready(factorized_linear(x, v, u, bias))
    assert out.shape == (B, d_out)
    assert jnp.allclose(out, ref, atol=1e-5, rtol=1e-5), "f32 mismatch vs reference"

    # bf16 compute path (v6e/v7x MXU-friendly); loose tolerance for bf16 inputs.
    out_bf16 = jax.block_until_ready(
        factorized_linear(x, v, u, bias, compute_dtype=jnp.bfloat16))
    assert out_bf16.shape == (B, d_out)
    assert jnp.allclose(out_bf16, ref, atol=1e-1, rtol=1e-1), "bf16 mismatch vs reference"

    print("KERNEL_OK")
</pallas_src>

<mosaic_0001>
module attributes {stable_mosaic.version = 11 : i64} {
  func.func @_factorized_linear_kernel(%arg0: i32, %arg1: i32, %arg2: memref<8x128xf32, #tpu.memory_space<vmem>>, %arg3: memref<128x128xf32, #tpu.memory_space<vmem>>, %arg4: memref<128x128xf32, #tpu.memory_space<vmem>>, %arg5: memref<1x128xf32, #tpu.memory_space<vmem>>, %arg6: memref<8x128xf32, #tpu.memory_space<vmem>>) attributes {dimension_semantics = [#tpu.dimension_semantics<parallel>, #tpu.dimension_semantics<parallel>], iteration_bounds = array<i64: 1, 1>, scalar_prefetch = 0 : i64, scratch_operands = 0 : i64, tpu.core_type = #tpu.core_type<tc>, window_params = [{transform_indices = @transform_0, window_bounds = array<i64: 8, 128>}, {pipeline_mode = #tpu.pipeline_mode<synchronous>, transform_indices = @transform_1, window_bounds = array<i64: 128, 128>}, {transform_indices = @transform_2, window_bounds = array<i64: 128, 128>}, {transform_indices = @transform_3, window_bounds = array<i64: 1, 128>}, {transform_indices = @transform_4, window_bounds = array<i64: 8, 128>}]} {
    %c0 = arith.constant 0 : index
    %c0_0 = arith.constant 0 : index
    %0 = vector.load %arg2[%c0, %c0_0] : memref<8x128xf32, #tpu.memory_space<vmem>>, vector<8x128xf32>
    %c0_1 = arith.constant 0 : index
    %c0_2 = arith.constant 0 : index
    %1 = vector.load %arg3[%c0_1, %c0_2] : memref<128x128xf32, #tpu.memory_space<vmem>>, vector<128x128xf32>
    %cst = arith.constant dense<0.000000e+00> : vector<8x128xf32>
    %2 = tpu.matmul %0, %1, %cst {dimension_numbers = #tpu.dot_dimension_numbers<[1], [0], [0], [1], [0, 0, 1, 1], [], []>} : vector<8x128xf32>, vector<128x128xf32>, vector<8x128xf32> -> vector<8x128xf32>
    %c0_3 = arith.constant 0 : index
    %c0_4 = arith.constant 0 : index
    %3 = vector.load %arg4[%c0_3, %c0_4] : memref<128x128xf32, #tpu.memory_space<vmem>>, vector<128x128xf32>
    %cst_5 = arith.constant dense<0.000000e+00> : vector<8x128xf32>
    %4 = tpu.matmul %2, %3, %cst_5 {dimension_numbers = #tpu.dot_dimension_numbers<[1], [0], [0], [1], [0, 0, 1, 1], [], []>} : vector<8x128xf32>, vector<128x128xf32>, vector<8x128xf32> -> vector<8x128xf32>
    %c0_6 = arith.constant 0 : index
    %c0_7 = arith.constant 0 : index
    %5 = vector.load %arg5[%c0_6, %c0_7] : memref<1x128xf32, #tpu.memory_space<vmem>>, vector<1x128xf32>
    %6 = vector.broadcast %5 : vector<1x128xf32> to vector<8x128xf32>
    %7 = arith.addf %4, %6 : vector<8x128xf32>
    %c0_8 = arith.constant 0 : index
    %c0_9 = arith.constant 0 : index
    %8 = vector.load %arg6[%c0_8, %c0_9] : memref<8x128xf32, #tpu.memory_space<vmem>>, vector<8x128xf32>
    tpu.vector_store %arg6[%c0_8, %c0_9], %7 {strides = array<i32>} : memref<8x128xf32, #tpu.memory_space<vmem>>, vector<8x128xf32>,
    return
  }
  func.func @transform_0(%arg0: i32, %arg1: i32) -> (i32, i32) {
    %c0_i32 = arith.constant 0 : i32
    %c0_i32_0 = arith.constant 0 : i32
    return %arg0, %c0_i32 : i32, i32
  }
  func.func @transform_1(%arg0: i32, %arg1: i32) -> (i32, i32) {
    %c0_i32 = arith.constant 0 : i32
    %c0_i32_0 = arith.constant 0 : i32
    %c0_i32_1 = arith.constant 0 : i32
    return %c0_i32, %c0_i32_0 : i32, i32
  }
  func.func @transform_2(%arg0: i32, %arg1: i32) -> (i32, i32) {
    %c0_i32 = arith.constant 0 : i32
    %c0_i32_0 = arith.constant 0 : i32
    return %c0_i32, %arg1 : i32, i32
  }
  func.func @transform_3(%arg0: i32, %arg1: i32) -> (i32, i32) {
    %c0_i32 = arith.constant 0 : i32
    %c0_i32_0 = arith.constant 0 : i32
    return %c0_i32, %arg1 : i32, i32
  }
  func.func @transform_4(%arg0: i32, %arg1: i32) -> (i32, i32) {
    %c0_i32 = arith.constant 0 : i32
    return %arg0, %arg1 : i32, i32
  }
}

</mosaic_0001>

<bundles_post_ra>
// kernel: factorized_linear.1
= control target key start
LH: loop header
LB: loop body
LE: loop exit
PB: predicated region body
PF: predicated region fallthrough
CT: control target
= control target key end

     0   :  { %9 = vsyncpa [#allocation3], 0  ;;  %s665_s0 = inlined_call_operand.hbm [shape: f32[8,128], index: 0, kind: input, shape index: {}]   ;;  %s666_s1 = inlined_call_operand.hbm [shape: f32[128,128], index: 1, kind: input, shape index: {}]   ;;  %s667_s2 = inlined_call_operand.hbm [shape: f32[128,128], index: 2, kind: input, shape index: {}]   ;;  %s668_s3 = inlined_call_operand.hbm [shape: f32[1,128], index: 3, kind: input, shape index: {}]   ;;  %s669_s4 = inlined_call_operand.hbm [shape: f32[8,128], index: 4, kind: output, shape index: {}]  }
   0x1   :  { %10 = vsyncpa [#allocation6], 0 }
   0x2   :  { %11 = vsyncpa [#allocation9], 0 }
   0x3   :  { %12 = vsyncpa [#allocation4], 0  ;;  %s548_s15 = smov [#allocation5]   ;;  %s430_s19 = scalar_lea.hbm %s666_s1, 2048 }
   0x4   :  { %s28_s16 = sshll.u32 %s548_s15, 4  ;;  %p431_p0 = scmp.ne.s32.totalorder %s666_s1, %s430_s19  ;;  %s29_s16 = int_to_ptr.vmem [resolvable:$true] %s28_s16 }
   0x5   :  { %p434_p1 = scmp.lt.u32.totalorder %s430_s19, %s666_s1 }
   0x7   :  { %p436_p2 = pnand %p434_p1, %p431_p0 }
   0x9   :  { %439 = shalt.err (!%p436_p2)
}
   0xa   :  { %s440_s24 = scalar_lea.vmem %s29_s16, 2048  ;;  %p445_p4 = scmp.lt.s32.totalorder %s29_s16, %s29_s16 }
   0xb   :  { %p441_p3 = scmp.ne.s32.totalorder %s29_s16, %s440_s24  ;;  %p446_p5 = scmp.lt.s32.totalorder %s440_s24, %s440_s24 }
   0xd   :  { %p447_p6 = por %p446_p5, %p445_p4 }
   0xf   :  { %p448_p7 = pnand %p447_p6, %p441_p3 }
  0x11   :  { %451 = shalt.err (!%p448_p7)
}
  0x12   :  { %s549_s25 = smov 128   ;;  %s550_s26 = smov 8  }
  0x13   :  { %34 = dma.hbm_to_vmem [thread:$0]  %s666_s1, 2048, %s29_s16, [#allocation6], %s549_s25, %s549_s25, %s550_s26  }
  0x14   :  { %s551_s29 = smov [#allocation2]   ;;  %s552_s5 = smov [#allocation7]  }
  0x15   :  { %s19_s30 = sshll.u32 %s551_s29, 4  ;;  %s40_s6 = sshll.u32 %s552_s5, 4  ;;  %s20_s30 = int_to_ptr.vmem [resolvable:$true] %s19_s30  ;;  %s41_s6 = int_to_ptr.vmem [resolvable:$true] %s40_s6 }
  0x16   :  { %s452_s9 = scalar_lea.hbm %s665_s0, 128 }
  0x17   :  { %p453_p8 = scmp.ne.s32.totalorder %s665_s0, %s452_s9  ;;  %p456_p9 = scmp.lt.u32.totalorder %s452_s9, %s665_s0 }
  0x19   :  { %p458_p10 = pnand %p456_p9, %p453_p8 }
  0x1b   :  { %461 = shalt.err (!%p458_p10)
}
  0x1c   :  { %s462_s1 = scalar_lea.vmem %s20_s30, 128  ;;  %p467_p12 = scmp.lt.s32.totalorder %s20_s30, %s20_s30 }
  0x1d   :  { %p463_p11 = scmp.ne.s32.totalorder %s20_s30, %s462_s1  ;;  %p468_p13 = scmp.lt.s32.totalorder %s462_s1, %s462_s1 }
  0x1f   :  { %p469_p0 = por %p468_p13, %p467_p12 }
  0x21   :  { %p470_p1 = pnand %p469_p0, %p463_p11 }
  0x23   :  { %473 = shalt.err (!%p470_p1)
}
  0x24   :  { %22 = dma.hbm_to_vmem [thread:$0]  %s665_s0, 128, %s20_s30, [#allocation3]  }
  0x25   :  { %s474_s18 = scalar_lea.hbm %s667_s2, 2048 }
  0x26   :  { %p475_p2 = scmp.ne.s32.totalorder %s667_s2, %s474_s18  ;;  %p478_p3 = scmp.lt.u32.totalorder %s474_s18, %s667_s2 }
  0x28   :  { %p480_p4 = pnand %p478_p3, %p475_p2 }
  0x2a   :  { %483 = shalt.err (!%p480_p4)
}
  0x2b   :  { %s484_s23 = scalar_lea.vmem %s41_s6, 2048  ;;  %p489_p6 = scmp.lt.s32.totalorder %s41_s6, %s41_s6 }
  0x2c   :  { %p485_p5 = scmp.ne.s32.totalorder %s41_s6, %s484_s23  ;;  %p490_p7 = scmp.lt.s32.totalorder %s484_s23, %s484_s23 }
  0x2e   :  { %p491_p8 = por %p490_p7, %p489_p6 }
  0x30   :  { %p492_p9 = pnand %p491_p8, %p485_p5 }
  0x32   :  { %495 = shalt.err (!%p492_p9)
}
  0x33   :  { %46 = dma.hbm_to_vmem [thread:$0]  %s667_s2, 2048, %s41_s6, [#allocation6], %s549_s25, %s549_s25, %s550_s26  }
  0x34   :  { %s553_s27 = smov [#allocation8]   ;;  %s496_s5 = scalar_lea.hbm %s668_s3, 16 }
  0x35   :  { %s53_s28 = sshll.u32 %s553_s27, 4  ;;  %p497_p10 = scmp.ne.s32.totalorder %s668_s3, %s496_s5  ;;  %s54_s28 = int_to_ptr.vmem [resolvable:$true] %s53_s28 }
  0x36   :  { %p500_p11 = scmp.lt.u32.totalorder %s496_s5, %s668_s3 }
  0x38   :  { %p502_p12 = pnand %p500_p11, %p497_p10 }
  0x3a   :  { %505 = shalt.err (!%p502_p12)
}
  0x3b   :  { %s506_s11 = scalar_lea.vmem %s54_s28, 16  ;;  %s510_s2 = scalar_lea.vmem %s54_s28, 32 }
  0x3c   :  { %p507_p13 = scmp.ne.s32.totalorder %s54_s28, %s506_s11  ;;  %p511_p0 = scmp.lt.s32.totalorder %s54_s28, %s54_s28 }
  0x3d   :  { %p512_p1 = scmp.lt.s32.totalorder %s510_s2, %s506_s11 }
  0x3f   :  { %p513_p2 = por %p512_p1, %p511_p0 }
  0x41   :  { %p514_p3 = pnand %p513_p2, %p507_p13 }
  0x43   :  { %517 = shalt.err (!%p514_p3)
}
  0x44   :  { %56 = dma.hbm_to_vmem [thread:$0]  %s668_s3, 16, %s54_s28, [#allocation9]  }
  0x45   :  { %540 = dma.done.wait [#allocation3], 128  }
  0x46   :  { %541 = vsyncadd [#allocation3], 4294967168 }
  0x47   :  { %542 = dma.done.wait [#allocation6], 4096  }
  0x48   :  { %543 = vsyncadd [#allocation6], 4294963200 }
  0x49   :  { %544 = dma.done.wait [#allocation9], 16  }
  0x4a   :  { %545 = vsyncadd [#allocation9], 4294967280  ;;  %v554_v0 = vmov 0.0|0.0   ;;  %vm555_vm0 = vmmov 0   ;;  %v556_v1 = vmov 0.0   ;;  %v70_v2 = vld [vmem:[#allocation5] sm:$0xff] }
  0x4b   :  { %372 = vmatprep.subr.bf16.mxu0 %v554_v0  ;;  %334 = vmatprep.mubr.msk.f32.mxu0 %vm555_vm0, %v556_v1  ;;  %v71_v3 = vld [vmem:[#allocation5 + $0x8] sm:$0xff]  ;;  %v72_v4 = vld [vmem:[#allocation5 + $0x10] sm:$0xff]  ;;  %v73_v6 = vld [vmem:[#allocation5 + $0x18] sm:$0xff]  ;;  %s557_s3 = smov [#allocation10]  }
  0x4c   :  { %396 = vmatprep.subr.bf16.mxu1 %v554_v0  ;;  %369 = vmatprep.mubr.msk.f32.mxu1 %vm555_vm0, %v556_v1  ;;  %v373_v5 = vpack.c.bf16 %v71_v3, %v70_v2  ;;  %v376_v7 = vpack.c.bf16 %v73_v6, %v72_v4  ;;  %v74_v8 = vld [vmem:[#allocation5 + $0x20] sm:$0xff]  ;;  %v75_v9 = vld [vmem:[#allocation5 + $0x28] sm:$0xff]  ;;  %v158_v12 = vld [vmem:[#allocation7 + $0x10] sm:$0xff]  ;;  %s256_s6 = sshll.u32 %s557_s3, 4  ;;  %s257_s6 = int_to_ptr.vmem [resolvable:$true] %s256_s6 }
  0x4d   :  { %v156_v10 = vld [vmem:[#allocation7] sm:$0xff]  ;;  %v157_v11 = vld [vmem:[#allocation7 + $0x8] sm:$0xff]  ;;  %v159_v13 = vld [vmem:[#allocation7 + $0x18] sm:$0xff]  ;;  %v379_v14 = vpack.c.bf16 %v75_v9, %v74_v8  ;;  %s518_s12 = scalar_lea.vmem %s257_s6, 128  ;;  %p523_p5 = scmp.lt.s32.totalorder %s257_s6, %s257_s6 }
  0x4e   :  { %374 = vmatpush3.bf16.msra.mxu0 %v373_v5  ;;  %v397_v15 = vpack.c.bf16 %v157_v11, %v156_v10  ;;  %v76_v16 = vld [vmem:[#allocation5 + $0x30] sm:$0xff]  ;;  %v77_v17 = vld [vmem:[#allocation5 + $0x38] sm:$0xff]  ;;  %v400_v18 = vpack.c.bf16 %v159_v13, %v158_v12  ;;  %v160_v19 = vld [vmem:[#allocation7 + $0x20] sm:$0xff]  ;;  %p519_p4 = scmp.ne.s32.totalorder %s257_s6, %s518_s12  ;;  %p524_p6 = scmp.lt.s32.totalorder %s518_s12, %s518_s12 }
  0x4f   :  { %375 = vmatprep.subr.bf16.mxu0 %v554_v0  ;;  %v161_v20 = vld [vmem:[#allocation7 + $0x28] sm:$0xff]  ;;  %v382_v21 = vpack.c.bf16 %v77_v17, %v76_v16  ;;  %v78_v22 = vld [vmem:[#allocation5 + $0x40] sm:$0xff]  ;;  %v162_v25 = vld [vmem:[#allocation7 + $0x30] sm:$0xff] }
  0x50   :  { %398 = vmatpush3.bf16.msra.mxu1 %v397_v15  ;;  %v79_v23 = vld [vmem:[#allocation5 + $0x48] sm:$0xff]  ;;  %v403_v24 = vpack.c.bf16 %v161_v20, %v160_v19  ;;  %v163_v26 = vld [vmem:[#allocation7 + $0x38] sm:$0xff]  ;;  %v80_v28 = vld [vmem:[#allocation5 + $0x50] sm:$0xff]  ;;  %p525_p7 = por %p524_p6, %p523_p5 }
  0x51   :  { %399 = vmatprep.subr.bf16.mxu1 %v554_v0  ;;  %v385_v27 = vpack.c.bf16 %v79_v23, %v78_v22  ;;  %v81_v29 = vld [vmem:[#allocation5 + $0x58] sm:$0xff]  ;;  %v406_v30 = vpack.c.bf16 %v163_v26, %v162_v25  ;;  %v164_v31 = vld [vmem:[#allocation7 + $0x40] sm:$0xff]  ;;  %v165_v32 = vld [vmem:[#allocation7 + $0x48] sm:$0xff] }
  0x52   :  { %377 = vmatpush3.bf16.msra.mxu0 %v376_v7  ;;  %v388_v33 = vpack.c.bf16 %v81_v29, %v80_v28  ;;  %v82_v34 = vld [vmem:[#allocation5 + $0x60] sm:$0xff]  ;;  %v83_v35 = vld [vmem:[#allocation5 + $0x68] sm:$0xff]  ;;  %v409_v36 = vpack.c.bf16 %v165_v32, %v164_v31  ;;  %v166_v37 = vld [vmem:[#allocation7 + $0x50] sm:$0xff]  ;;  %p526_p8 = pnand %p525_p7, %p519_p4 }
  0x53   :  { %378 = vmatprep.subr.bf16.mxu0 %v554_v0  ;;  %v167_v38 = vld [vmem:[#allocation7 + $0x58] sm:$0xff]  ;;  %v391_v39 = vpack.c.bf16 %v83_v35, %v82_v34  ;;  %v84_v40 = vld [vmem:[#allocation5 + $0x70] sm:$0xff]  ;;  %v168_v43 = vld [vmem:[#allocation7 + $0x60] sm:$0xff] }
  0x54   :  { %401 = vmatpush3.bf16.msra.mxu1 %v400_v18  ;;  %v85_v41 = vld [vmem:[#allocation5 + $0x78] sm:$0xff]  ;;  %v412_v42 = vpack.c.bf16 %v167_v38, %v166_v37  ;;  %v169_v44 = vld [vmem:[#allocation7 + $0x68] sm:$0xff]  ;;  %v170_v47 = vld [vmem:[#allocation7 + $0x70] sm:$0xff] }
  0x55   :  { %402 = vmatprep.subr.bf16.mxu1 %v554_v0  ;;  %v394_v45 = vpack.c.bf16 %v85_v41, %v84_v40  ;;  %v415_v46 = vpack.c.bf16 %v169_v44, %v168_v43  ;;  %v171_v48 = vld [vmem:[#allocation7 + $0x78] sm:$0xff]  ;;  %v267_v53 = vld [vmem:[#allocation8] ss:$0 sm:$0xff] }
  0x56   :  { %380 = vmatpush3.bf16.msra.mxu0 %v379_v14  ;;  %v69_v49 = vld [vmem:[#allocation2] sm:$0xff]  ;;  %v418_v50 = vpack.c.bf16 %v171_v48, %v170_v47 }
  0x57   :  { %381 = vmatprep.subr.bf16.mxu0 %v554_v0 }
  0x58   :  { %404 = vmatpush3.bf16.msra.mxu1 %v403_v24 }
  0x59   :  { %405 = vmatprep.subr.bf16.mxu1 %v554_v0 }
  0x5a   :  { %383 = vmatpush3.bf16.msra.mxu0 %v382_v21 }
  0x5b   :  { %384 = vmatprep.subr.bf16.mxu0 %v554_v0 }
  0x5c   :  { %407 = vmatpush3.bf16.msra.mxu1 %v406_v30 }
  0x5d   :  { %408 = vmatprep.subr.bf16.mxu1 %v554_v0 }
  0x5e   :  { %386 = vmatpush3.bf16.msra.mxu0 %v385_v27 }
  0x5f   :  { %387 = vmatprep.subr.bf16.mxu0 %v554_v0 }
  0x60   :  { %410 = vmatpush3.bf16.msra.mxu1 %v409_v36 }
  0x61   :  { %411 = vmatprep.subr.bf16.mxu1 %v554_v0 }
  0x62   :  { %389 = vmatpush3.bf16.msra.mxu0 %v388_v33 }
  0x63   :  { %390 = vmatprep.subr.bf16.mxu0 %v554_v0 }
  0x64   :  { %413 = vmatpush3.bf16.msra.mxu1 %v412_v42 }
  0x65   :  { %414 = vmatprep.subr.bf16.mxu1 %v554_v0 }
  0x66   :  { %392 = vmatpush3.bf16.msra.mxu0 %v391_v39 }
  0x67   :  { %393 = vmatprep.subr.bf16.mxu0 %v554_v0 }
  0x68   :  { %416 = vmatpush3.bf16.msra.mxu1 %v415_v46 }
  0x69   :  { %417 = vmatprep.subr.bf16.mxu1 %v554_v0 }
  0x6a   :  { %395 = vmatpush3.bf16.msra.mxu0 %v394_v45 }
  0x6c   :  { %419 = vmatpush3.bf16.msra.mxu1 %v418_v50 }
  0x6d   :  { %335 = vmatmul.mubr.f32.vlgmr.msra.gmra.mrb[0].mxu0 %v69_v49 }
 0x140   :  { %v152_v51 = vpop.f32.mrb[0].mxu0 }
 0x141   :  { %v336_v52 = vpop.f32.mrb[1].mxu0  ;;  %370 = vmatmul.mubr.f32.vlgmr.msra.gmra.mrb[0].mxu1 %v152_v51 }
 0x214   :  { %v245_v54 = vpop.f32.mrb[0].mxu1 }
 0x215   :  { %v246_v55 = vadd.f32 %v267_v53, %v245_v54  ;;  %v371_v56 = vpop.f32.mrb[1].mxu1 }
 0x217   :  { %249 = vst [vmem:[#allocation10] sm:$0xff] %v246_v55 }
 0x218   :  { %529 = shalt.err (!%p526_p8)
}
 0x219   :  { %s530_s14 = scalar_lea.hbm %s669_s4, 128 }
 0x21a   :  { %p531_p9 = scmp.ne.s32.totalorder %s669_s4, %s530_s14  ;;  %p534_p10 = scmp.lt.u32.totalorder %s530_s14, %s669_s4 }
 0x21c   :  { %p536_p11 = pnand %p534_p10, %p531_p9 }
 0x21e   :  { %539 = shalt.err (!%p536_p11)
}
 0x21f   :  { %259 = dma.vmem_to_hbm [thread:$0]  %s257_s6, 128, %s669_s4, [#allocation4]  }
 0x220   :  { %546 = dma.done.wait [#allocation4], 128  }
 0x221   :  { %547 = vsyncadd [#allocation4], 4294967168 }
 0x222   :  { %263 = vsyncpa [#allocation3], 1 }
 0x223   :  { %264 = vsyncpa [#allocation6], 1 }
 0x224   :  { %265 = vsyncpa [#allocation9], 1 }
 0x225   :  { %266 = vsyncpa [#allocation4], 1 }

</bundles_post_ra>
